<compile_context>
chip_gen: v7x
topology: tpu7x:2x2x1
jax: 0.10.0
libtpu: 0.0.40
codegen_flags: <defaults>
</compile_context>

<pallas_src>
import jax
import jax.numpy as jnp
from jax.experimental import pallas as pl
from jax.experimental.pallas import tpu as pltpu

# --- config (mirrors the PyTorch module's __init__) -------------------------
ENC_OUT_SIZE = 32            # config['enc_out_size']  (no 'similar' key -> _in_size = enc_out_size)
HIDDEN_LAYERS = [64, 32]     # config['hidden_layers']
ACTION_DIM = 6               # config['action_dim']    (Discrete action space)
GAMMA = 0.99                 # config['dqn_gamma']
LAYER_SIZES = [ENC_OUT_SIZE, *HIDDEN_LAYERS, ACTION_DIM]
BATCH = 8


# ---------------------------------------------------------------------------
# Kernel: fused online+target MLP (block-diag, lane-padded weights) + epilogue.
# ---------------------------------------------------------------------------
def dqn_fused_kernel(xx_ref, ard_ref, w1_ref, w2_ref, w3_ref, b_ref, out_ref):
    # xx_ref : (Bt, 64)   bf16  -> [x | trg_x]
    # ard_ref: (Bt, 4)    f32   -> col0 action, col1 reward, col2 done, col3 pad
    # w1_ref : (64, 128)  bf16  block-diag [W1 | tW1]
    # w2_ref : (128, 128) bf16  block-diag [W2 | tW2], cols 64:128 zero-padded
    # w3_ref : (128, 128) bf16  block-diag [W3 | tW3], rows 64:/cols 12: zero-padded
    # b_ref  : (3, 128)   f32   -> row l = [online bias | target bias | zeros]
    # out_ref: (Bt, 2)    f32   -> col0 target_q, col1 q_sel

    # Layer 1: (Bt,64) @ (64,128) -> (Bt,128); full-lane bias add.
    h = jnp.dot(xx_ref[...], w1_ref[...], preferred_element_type=jnp.float32) + b_ref[0:1, :]
    h = jnp.maximum(h, 0.0).astype(jnp.bfloat16)

    # Layer 2: (Bt,128) @ (128,128) -> (Bt,128); padded lanes stay exactly 0.
    h = jnp.dot(h, w2_ref[...], preferred_element_type=jnp.float32) + b_ref[1:2, :]
    h = jnp.maximum(h, 0.0).astype(jnp.bfloat16)

    # Layer 3 (no activation): (Bt,128) @ (128,128) -> (Bt,128)
    # cols [0:A) = q_online, [A:2A) = q_target, rest zero padding.
    qq = jnp.dot(h, w3_ref[...], preferred_element_type=jnp.float32) + b_ref[2:3, :]

    Bt = qq.shape[0]
    A = ACTION_DIM
    col = jax.lax.broadcasted_iota(jnp.int32, (Bt, qq.shape[1]), 1)

    action = ard_ref[:, 0:1].astype(jnp.int32)     # exact for small action IDs in f32
    reward = ard_ref[:, 1:2]
    not_done = 1.0 - ard_ref[:, 2:3]

    # Online gather: restrict the iota compare to the online network's A columns.
    q_sel = jnp.sum(jnp.where((col < A) & (col == action), qq, 0.0),
                    axis=1, keepdims=True)
    # Target max: only the target network's columns; padded zero columns must not win.
    tq_max = jnp.max(jnp.where((col >= A) & (col < 2 * A), qq, -jnp.inf),
                     axis=1, keepdims=True)
    target_q = reward + GAMMA * tq_max * not_done

    # Single full-block store (2-lane select instead of a concatenate relayout).
    lane = jax.lax.broadcasted_iota(jnp.int32, (Bt, 2), 1)
    out_ref[...] = jnp.where(lane == 0, target_q, q_sel)


# ---------------------------------------------------------------------------
# Parameter packing (done once; re-pack only when the networks update).
# ---------------------------------------------------------------------------
def pack_params(ws, bs, tws, tbs):
    def blockdiag_pad(a, b, rows, cols):
        m1, n1 = a.shape
        m2, n2 = b.shape
        out = jnp.zeros((rows, cols), jnp.float32)
        out = out.at[:m1, :n1].set(a)
        out = out.at[m1:m1 + m2, n1:n1 + n2].set(b)
        return out

    w1p = blockdiag_pad(ws[0], tws[0], 2 * ENC_OUT_SIZE, 128).astype(jnp.bfloat16)   # (64, 128)
    w2p = blockdiag_pad(ws[1], tws[1], 128, 128).astype(jnp.bfloat16)                # (128, 128)
    w3p = blockdiag_pad(ws[2], tws[2], 128, 128).astype(jnp.bfloat16)                # (128, 128)

    bp = jnp.zeros((3, 128), jnp.float32)
    bp = bp.at[0, 0:2 * HIDDEN_LAYERS[0]].set(jnp.concatenate([bs[0][0], tbs[0][0]]))
    bp = bp.at[1, 0:2 * HIDDEN_LAYERS[1]].set(jnp.concatenate([bs[1][0], tbs[1][0]]))
    bp = bp.at[2, 0:2 * ACTION_DIM].set(jnp.concatenate([bs[2][0], tbs[2][0]]))
    return w1p, w2p, w3p, bp


# ---------------------------------------------------------------------------
# Row-tile choice: big tiles (>=512 rows) for HBM roofline, grid >= 2 for large
# batches so both v7x TensorCores are used, and always a divisor of B.
# ---------------------------------------------------------------------------
def _choose_row_tile(B):
    if B <= 512:
        return B                      # single grid step; tiny batches are latency-bound anyway
    for tile in (2048, 1024, 512, 256, 128, 64, 32, 16, 8):
        if B % tile == 0 and B // tile >= 2:
            return tile
    return B                          # fallback: one full-batch tile


# ---------------------------------------------------------------------------
# Forward wrapper.
# ---------------------------------------------------------------------------
@jax.jit
def dqn_forward(x, trg_x, action, reward, done, w1p, w2p, w3p, bp):
    B = x.shape[0]
    # Pack per-transition inputs into two lane-friendly slabs (2 streamed DMAs).
    xx = jnp.concatenate([x, trg_x], axis=1).astype(jnp.bfloat16)          # (B, 64) bf16
    ard = jnp.concatenate([action.astype(jnp.float32), reward, done,
                           jnp.zeros((B, 1), jnp.float32)], axis=1)        # (B, 4)  f32

    row_tile = _choose_row_tile(B)
    grid = (B // row_tile,)

    def wspec(shape):
        return pl.BlockSpec(shape, lambda i: (0, 0))   # weights resident across grid steps

    flops = 2 * B * (64 * 128 + 128 * 128 + 128 * 128)
    bytes_accessed = (xx.size * 2 + ard.size * 4
                      + (w1p.size + w2p.size + w3p.size) * 2 + bp.size * 4
                      + B * 2 * 4)
    cost = pl.CostEstimate(flops=flops, transcendentals=0, bytes_accessed=bytes_accessed)

    out = pl.pallas_call(
        dqn_fused_kernel,
        out_shape=jax.ShapeDtypeStruct((B, 2), jnp.float32),
        grid=grid,
        in_specs=[
            pl.BlockSpec((row_tile, xx.shape[1]), lambda i: (i, 0)),
            pl.BlockSpec((row_tile, ard.shape[1]), lambda i: (i, 0)),
            wspec(w1p.shape), wspec(w2p.shape), wspec(w3p.shape), wspec(bp.shape),
        ],
        out_specs=pl.BlockSpec((row_tile, 2), lambda i: (i, 0)),
        compiler_params=pltpu.CompilerParams(dimension_semantics=("parallel",)),
        cost_estimate=cost,
    )(xx, ard, w1p, w2p, w3p, bp)

    return out[:, 0:1], out[:, 1:2]       # (target_q_vals, q_vals)


# ---------------------------------------------------------------------------
# Reference & synthetic params.
# ---------------------------------------------------------------------------
def init_params(key, layer_sizes):
    """Deterministic synthetic Linear params: W (in, out), b (1, out)."""
    ws, bs = [], []
    for d_in, d_out in zip(layer_sizes[:-1], layer_sizes[1:]):
        key, kw, kb = jax.random.split(key, 3)
        scale = 1.0 / jnp.sqrt(jnp.float32(d_in))
        ws.append(jax.random.uniform(kw, (d_in, d_out), jnp.float32, -scale, scale))
        bs.append(jax.random.uniform(kb, (1, d_out), jnp.float32, -scale, scale))
    return ws, bs, key


def reference_forward(x, trg_x, action, reward, done, ws, bs, tws, tbs, quantize=False):
    def mlp(h, W, Bs):
        for i in range(len(W)):
            w = W[i]
            if quantize:                       # emulate the kernel's bf16 inputs / f32 accum
                w = w.astype(jnp.bfloat16)
                h = h.astype(jnp.bfloat16)
            h = jnp.dot(h, w, preferred_element_type=jnp.float32) + Bs[i]
            if i < len(W) - 1:
                h = jnp.maximum(h, 0.0)
        return h

    q = mlp(x, ws, bs)
    q_vals = jnp.take_along_axis(q, action, axis=1)
    tq = mlp(trg_x, tws, tbs)
    target_q = reward + GAMMA * jnp.max(tq, axis=1, keepdims=True) * (1.0 - done)
    return target_q, q_vals


if __name__ == "__main__":
    key = jax.random.PRNGKey(0)

    # online + target network params (target = deepcopy semantics is irrelevant for
    # a synthetic run; the target net just gets its own deterministic params).
    ws, bs, key = init_params(key, LAYER_SIZES)
    tws, tbs, key = init_params(key, LAYER_SIZES)

    key, kx, ktx, ka, kr, kd = jax.random.split(key, 6)
    x      = jax.random.normal(kx,  (BATCH, ENC_OUT_SIZE), jnp.float32)
    trg_x  = jax.random.normal(ktx, (BATCH, ENC_OUT_SIZE), jnp.float32)
    action = jax.random.randint(ka, (BATCH, 1), 0, ACTION_DIM, jnp.int32)
    reward = jax.random.normal(kr,  (BATCH, 1), jnp.float32)
    done   = jax.random.bernoulli(kd, 0.3, (BATCH, 1)).astype(jnp.float32)

    # Pack once (re-pack only when the online/target weights change).
    w1p, w2p, w3p, bp = pack_params(ws, bs, tws, tbs)

    target_q, q_vals = dqn_forward(x, trg_x, action, reward, done, w1p, w2p, w3p, bp)
    jax.block_until_ready((target_q, q_vals))

    # Strict check vs a reference that applies the same bf16 quantization as the kernel.
    ref_tq_q, ref_q_q = reference_forward(x, trg_x, action, reward, done,
                                          ws, bs, tws, tbs, quantize=True)
    assert jnp.allclose(target_q, ref_tq_q, atol=1e-3, rtol=1e-3), "target_q mismatch (quantized ref)"
    assert jnp.allclose(q_vals, ref_q_q, atol=1e-3, rtol=1e-3), "q_vals mismatch (quantized ref)"

    # Fidelity check vs the original full-f32 math (bf16 weights/activations loosen tolerance).
    ref_tq, ref_q = reference_forward(x, trg_x, action, reward, done, ws, bs, tws, tbs)
    assert jnp.allclose(target_q, ref_tq, atol=5e-2, rtol=5e-2), "target_q mismatch (f32 ref)"
    assert jnp.allclose(q_vals, ref_q, atol=5e-2, rtol=5e-2), "q_vals mismatch (f32 ref)"

    print("KERNEL_OK")
</pallas_src>

<mosaic_0001>
module attributes {stable_mosaic.version = 11 : i64} {
  func.func @dqn_fused_kernel(%arg0: i32, %arg1: memref<8x64xbf16, #tpu.memory_space<vmem>>, %arg2: memref<8x4xf32, #tpu.memory_space<vmem>>, %arg3: memref<64x128xbf16, #tpu.memory_space<vmem>>, %arg4: memref<128x128xbf16, #tpu.memory_space<vmem>>, %arg5: memref<128x128xbf16, #tpu.memory_space<vmem>>, %arg6: memref<3x128xf32, #tpu.memory_space<vmem>>, %arg7: memref<8x2xf32, #tpu.memory_space<vmem>>) attributes {dimension_semantics = [#tpu.dimension_semantics<parallel>], iteration_bounds = array<i64: 1>, scalar_prefetch = 0 : i64, scratch_operands = 0 : i64, tpu.core_type = #tpu.core_type<tc>, window_params = [{transform_indices = @transform_0, window_bounds = array<i64: 8, 64>}, {transform_indices = @transform_1, window_bounds = array<i64: 8, 4>}, {pipeline_mode = #tpu.pipeline_mode<synchronous>, transform_indices = @transform_2, window_bounds = array<i64: 64, 128>}, {pipeline_mode = #tpu.pipeline_mode<synchronous>, transform_indices = @transform_3, window_bounds = array<i64: 128, 128>}, {pipeline_mode = #tpu.pipeline_mode<synchronous>, transform_indices = @transform_4, window_bounds = array<i64: 128, 128>}, {pipeline_mode = #tpu.pipeline_mode<synchronous>, transform_indices = @transform_5, window_bounds = array<i64: 3, 128>}, {transform_indices = @transform_6, window_bounds = array<i64: 8, 2>}]} {
    %c0 = arith.constant 0 : index
    %c0_0 = arith.constant 0 : index
    %0 = vector.load %arg1[%c0, %c0_0] : memref<8x64xbf16, #tpu.memory_space<vmem>>, vector<8x64xbf16>
    %c0_1 = arith.constant 0 : index
    %c0_2 = arith.constant 0 : index
    %1 = vector.load %arg3[%c0_1, %c0_2] : memref<64x128xbf16, #tpu.memory_space<vmem>>, vector<64x128xbf16>
    %cst = arith.constant dense<0.000000e+00> : vector<8x128xf32>
    %2 = tpu.matmul %0, %1, %cst {dimension_numbers = #tpu.dot_dimension_numbers<[1], [0], [0], [1], [0, 0, 1, 1], [], []>} : vector<8x64xbf16>, vector<64x128xbf16>, vector<8x128xf32> -> vector<8x128xf32>
    %c0_3 = arith.constant 0 : index
    %c0_4 = arith.constant 0 : index
    %3 = vector.load %arg6[%c0_3, %c0_4] : memref<3x128xf32, #tpu.memory_space<vmem>>, vector<1x128xf32>
    %4 = vector.broadcast %3 : vector<1x128xf32> to vector<8x128xf32>
    %5 = arith.addf %2, %4 : vector<8x128xf32>
    %cst_5 = arith.constant 0.000000e+00 : f32
    %6 = vector.broadcast %cst_5 : f32 to vector<8x128xf32>
    %7 = arith.maximumf %5, %6 : vector<8x128xf32>
    %8 = arith.truncf %7 : vector<8x128xf32> to vector<8x128xbf16>
    %c0_6 = arith.constant 0 : index
    %c0_7 = arith.constant 0 : index
    %9 = vector.load %arg4[%c0_6, %c0_7] : memref<128x128xbf16, #tpu.memory_space<vmem>>, vector<128x128xbf16>
    %cst_8 = arith.constant dense<0.000000e+00> : vector<8x128xf32>
    %10 = tpu.matmul %8, %9, %cst_8 {dimension_numbers = #tpu.dot_dimension_numbers<[1], [0], [0], [1], [0, 0, 1, 1], [], []>} : vector<8x128xbf16>, vector<128x128xbf16>, vector<8x128xf32> -> vector<8x128xf32>
    %c1 = arith.constant 1 : index
    %c0_9 = arith.constant 0 : index
    %11 = vector.load %arg6[%c1, %c0_9] : memref<3x128xf32, #tpu.memory_space<vmem>>, vector<1x128xf32>
    %12 = vector.broadcast %11 : vector<1x128xf32> to vector<8x128xf32>
    %13 = arith.addf %10, %12 : vector<8x128xf32>
    %cst_10 = arith.constant 0.000000e+00 : f32
    %14 = vector.broadcast %cst_10 : f32 to vector<8x128xf32>
    %15 = arith.maximumf %13, %14 : vector<8x128xf32>
    %16 = arith.truncf %15 : vector<8x128xf32> to vector<8x128xbf16>
    %c0_11 = arith.constant 0 : index
    %c0_12 = arith.constant 0 : index
    %17 = vector.load %arg5[%c0_11, %c0_12] : memref<128x128xbf16, #tpu.memory_space<vmem>>, vector<128x128xbf16>
    %cst_13 = arith.constant dense<0.000000e+00> : vector<8x128xf32>
    %18 = tpu.matmul %16, %17, %cst_13 {dimension_numbers = #tpu.dot_dimension_numbers<[1], [0], [0], [1], [0, 0, 1, 1], [], []>} : vector<8x128xbf16>, vector<128x128xbf16>, vector<8x128xf32> -> vector<8x128xf32>
    %c2 = arith.constant 2 : index
    %c0_14 = arith.constant 0 : index
    %19 = vector.load %arg6[%c2, %c0_14] : memref<3x128xf32, #tpu.memory_space<vmem>>, vector<1x128xf32>
    %20 = vector.broadcast %19 : vector<1x128xf32> to vector<8x128xf32>
    %21 = arith.addf %18, %20 : vector<8x128xf32>
    %22 = tpu.iota {dimensions = array<i32: 1>} : vector<8x128xi32>
    %c0_15 = arith.constant 0 : index
    %c0_16 = arith.constant 0 : index
    %23 = vector.load %arg2[%c0_15, %c0_16] : memref<8x4xf32, #tpu.memory_space<vmem>>, vector<8x1xf32>
    %24 = arith.fptosi %23 : vector<8x1xf32> to vector<8x1xi32>
    %c0_17 = arith.constant 0 : index
    %c1_18 = arith.constant 1 : index
    %25 = vector.load %arg2[%c0_17, %c1_18] : memref<8x4xf32, #tpu.memory_space<vmem>>, vector<8x1xf32>
    %c0_19 = arith.constant 0 : index
    %c2_20 = arith.constant 2 : index
    %26 = vector.load %arg2[%c0_19, %c2_20] : memref<8x4xf32, #tpu.memory_space<vmem>>, vector<8x1xf32>
    %cst_21 = arith.constant 1.000000e+00 : f32
    %27 = vector.broadcast %cst_21 : f32 to vector<8x1xf32>
    %28 = arith.subf %27, %26 : vector<8x1xf32>
    %c6_i32 = arith.constant 6 : i32
    %29 = vector.broadcast %c6_i32 : i32 to vector<8x128xi32>
    %30 = arith.cmpi slt, %22, %29 : vector<8x128xi32>
    %31 = vector.broadcast %24 : vector<8x1xi32> to vector<8x128xi32>
    %32 = arith.cmpi eq, %22, %31 : vector<8x128xi32>
    %33 = arith.andi %30, %32 : vector<8x128xi1>
    %cst_22 = arith.constant 0.000000e+00 : f32
    %34 = vector.broadcast %cst_22 : f32 to vector<8x128xf32>
    %35 = arith.select %33, %21, %34 : vector<8x128xi1>, vector<8x128xf32>
    %cst_23 = arith.constant dense<0.000000e+00> : vector<8xf32>
    %36 = vector.multi_reduction <add>, %35, %cst_23 [1] : vector<8x128xf32> to vector<8xf32>
    %37 = vector.shape_cast %36 : vector<8xf32> to vector<8x1xf32>
    %c6_i32_24 = arith.constant 6 : i32
    %38 = vector.broadcast %c6_i32_24 : i32 to vector<8x128xi32>
    %39 = arith.cmpi sge, %22, %38 : vector<8x128xi32>
    %c12_i32 = arith.constant 12 : i32
    %40 = vector.broadcast %c12_i32 : i32 to vector<8x128xi32>
    %41 = arith.cmpi slt, %22, %40 : vector<8x128xi32>
    %42 = arith.andi %39, %41 : vector<8x128xi1>
    %cst_25 = arith.constant 0xFF800000 : f32
    %43 = vector.broadcast %cst_25 : f32 to vector<8x128xf32>
    %44 = arith.select %42, %21, %43 : vector<8x128xi1>, vector<8x128xf32>
    %cst_26 = arith.constant dense<0xFF800000> : vector<8xf32>
    %45 = vector.multi_reduction <maximumf>, %44, %cst_26 [1] : vector<8x128xf32> to vector<8xf32>
    %46 = vector.shape_cast %45 : vector<8xf32> to vector<8x1xf32>
    %cst_27 = arith.constant 9.900000e-01 : f32
    %47 = vector.broadcast %cst_27 : f32 to vector<8x1xf32>
    %48 = arith.mulf %47, %46 : vector<8x1xf32>
    %49 = arith.mulf %48, %28 : vector<8x1xf32>
    %50 = arith.addf %25, %49 : vector<8x1xf32>
    %51 = tpu.iota {dimensions = array<i32: 1>} : vector<8x2xi32>
    %c0_i32 = arith.constant 0 : i32
    %52 = vector.broadcast %c0_i32 : i32 to vector<8x2xi32>
    %53 = arith.cmpi eq, %51, %52 : vector<8x2xi32>
    %54 = vector.shape_cast %50 : vector<8x1xf32> to vector<8x1xf32>
    %55 = vector.broadcast %54 : vector<8x1xf32> to vector<8x2xf32>
    %56 = vector.shape_cast %37 : vector<8x1xf32> to vector<8x1xf32>
    %57 = vector.broadcast %56 : vector<8x1xf32> to vector<8x2xf32>
    %58 = arith.select %53, %55, %57 : vector<8x2xi1>, vector<8x2xf32>
    %c0_28 = arith.constant 0 : index
    %c0_29 = arith.constant 0 : index
    %59 = vector.load %arg7[%c0_28, %c0_29] : memref<8x2xf32, #tpu.memory_space<vmem>>, vector<8x2xf32>
    tpu.vector_store %arg7[%c0_28, %c0_29], %58 {strides = array<i32>} : memref<8x2xf32, #tpu.memory_space<vmem>>, vector<8x2xf32>,
    return
  }
  func.func @transform_0(%arg0: i32) -> (i32, i32) {
    %c0_i32 = arith.constant 0 : i32
    %c0_i32_0 = arith.constant 0 : i32
    return %arg0, %c0_i32 : i32, i32
  }
  func.func @transform_1(%arg0: i32) -> (i32, i32) {
    %c0_i32 = arith.constant 0 : i32
    %c0_i32_0 = arith.constant 0 : i32
    return %arg0, %c0_i32 : i32, i32
  }
  func.func @transform_2(%arg0: i32) -> (i32, i32) {
    %c0_i32 = arith.constant 0 : i32
    %c0_i32_0 = arith.constant 0 : i32
    %c0_i32_1 = arith.constant 0 : i32
    return %c0_i32, %c0_i32_0 : i32, i32
  }
  func.func @transform_3(%arg0: i32) -> (i32, i32) {
    %c0_i32 = arith.constant 0 : i32
    %c0_i32_0 = arith.constant 0 : i32
    %c0_i32_1 = arith.constant 0 : i32
    return %c0_i32, %c0_i32_0 : i32, i32
  }
  func.func @transform_4(%arg0: i32) -> (i32, i32) {
    %c0_i32 = arith.constant 0 : i32
    %c0_i32_0 = arith.constant 0 : i32
    %c0_i32_1 = arith.constant 0 : i32
    return %c0_i32, %c0_i32_0 : i32, i32
  }
  func.func @transform_5(%arg0: i32) -> (i32, i32) {
    %c0_i32 = arith.constant 0 : i32
    %c0_i32_0 = arith.constant 0 : i32
    %c0_i32_1 = arith.constant 0 : i32
    return %c0_i32, %c0_i32_0 : i32, i32
  }
  func.func @transform_6(%arg0: i32) -> (i32, i32) {
    %c0_i32 = arith.constant 0 : i32
    %c0_i32_0 = arith.constant 0 : i32
    return %arg0, %c0_i32 : i32, i32
  }
}

</mosaic_0001>

<bundles_post_ra>
// kernel: dqn_forward.1
= control target key start
LH: loop header
LB: loop body
LE: loop exit
PB: predicated region body
PF: predicated region fallthrough
CT: control target
= control target key end

     0   :  { %11 = vsyncpa [#allocation3], 0  ;;  %s539_s21 = smov [#allocation2]   ;;  %s674_s0 = inlined_call_operand.vmem [shape: bf16[8,64], index: 0, kind: input, shape index: {}]   ;;  %s675_s1 = inlined_call_operand.vmem [shape: f32[8,4], index: 1, kind: input, shape index: {}]   ;;  %s676_s2 = inlined_call_operand.vmem [shape: bf16[64,128], index: 2, kind: input, shape index: {}]   ;;  %s677_s3 = inlined_call_operand.vmem [shape: bf16[128,128], index: 3, kind: input, shape index: {}]   ;;  %s678_s4 = inlined_call_operand.hbm [shape: bf16[128,128], index: 4, kind: input, shape index: {}]   ;;  %s679_s5 = inlined_call_operand.vmem [shape: f32[3,128], index: 5, kind: input, shape index: {}]   ;;  %s680_s6 = inlined_call_operand.vmem [shape: f32[8,2], index: 6, kind: output, shape index: {}]  }
   0x1   :  { %s25_s22 = sshll.u32 %s539_s21, 4  ;;  %s515_s25 = scalar_lea.hbm %s678_s4, 1024  ;;  %s26_s22 = int_to_ptr.vmem [resolvable:$true] %s25_s22 }
   0x2   :  { %p516_p0 = scmp.ne.s32.totalorder %s678_s4, %s515_s25  ;;  %p519_p1 = scmp.lt.u32.totalorder %s515_s25, %s678_s4 }
   0x4   :  { %p521_p2 = pnand %p519_p1, %p516_p0 }
   0x6   :  { %524 = shalt.err (!%p521_p2)
}
   0x7   :  { %s525_s30 = scalar_lea.vmem %s26_s22, 1024  ;;  %p530_p4 = scmp.lt.s32.totalorder %s26_s22, %s26_s22 }
   0x8   :  { %p526_p3 = scmp.ne.s32.totalorder %s26_s22, %s525_s30  ;;  %p531_p5 = scmp.lt.s32.totalorder %s525_s30, %s525_s30 }
   0xa   :  { %p532_p6 = por %p531_p5, %p530_p4 }
   0xc   :  { %p533_p7 = pnand %p532_p6, %p526_p3 }
   0xe   :  { %536 = shalt.err (!%p533_p7)
}
   0xf   :  { %s540_s7 = smov 64   ;;  %s541_s8 = smov 4  }
  0x10   :  { %31 = dma.hbm_to_vmem [thread:$0]  %s678_s4, 1024, %s26_s22, [#allocation3], %s540_s7, %s540_s7, %s541_s8  }
  0x11   :  { %537 = dma.done.wait [#allocation3], 1024  }
  0x12   :  { %538 = vsyncadd [#allocation3], 4294966272  ;;  %v542_v0 = vmov 0.0   ;;  %vm543_vm0 = vmmov 0   ;;  %v495_v1 = vld [vmem:[%s676_s2] sm:$0xff]   ;;  %v496_v2 = vld [vmem:[%s676_s2 + $0x8] sm:$0xff]   ;;  %v342_v39 = vlaneseq }
  0x13   :  { %430 = vmatprep.subr.bf16.mxu0 %v542_v0  ;;  %438 = vmatprep.mubr.msk.bf16.mxu0 %vm543_vm0, %v542_v0  ;;  %v499_v3 = vld [vmem:[%s677_s3] sm:$0xff]   ;;  %v497_v4 = vld [vmem:[%s676_s2 + $0x10] sm:$0xff]   ;;  %v500_v5 = vld [vmem:[%s677_s3 + $0x8] sm:$0xff]   ;;  %vm76_vm1 = vcmask 523264   ;;  %v544_v38 = vmov 0   ;;  %v545_v51 = vmov 1  }
  0x14   :  { %442 = vmatprep.subr.bf16.mxu1 %v542_v0  ;;  %458 = vmatprep.mubr.msk.bf16.mxu1 %vm543_vm0, %v542_v0  ;;  %v498_v6 = vld [vmem:[%s676_s2 + $0x18] sm:$0xff]   ;;  %v501_v7 = vld [vmem:[%s677_s3 + $0x10] sm:$0xff]   ;;  %v38_v8 = vld [vmem:[%s674_s0] sm:$0xf]  ;;  %v343_v40 = vand.u32 127, %v342_v39  ;;  %vm376_vm9 = vcmask 15360  }
  0x15   :  { %431 = vmatpush3.bf16.msra.mxu0 %v495_v1  ;;  %443 = vmatpush3.bf16.msra.mxu1 %v499_v3  ;;  %v502_v9 = vld [vmem:[%s677_s3 + $0x18] sm:$0xff]   ;;  %v503_v10 = vld [vmem:[%s677_s3 + $0x20] sm:$0xff]   ;;  %v504_v11 = vld [vmem:[%s677_s3 + $0x28] sm:$0xff]  }
  0x16   :  { %432 = vmatprep.subr.bf16.mxu0 %v542_v0  ;;  %444 = vmatprep.subr.bf16.mxu1 %v542_v0  ;;  %v505_v12 = vld [vmem:[%s677_s3 + $0x30] sm:$0xff]   ;;  %v506_v13 = vld [vmem:[%s677_s3 + $0x38] sm:$0xff]   ;;  %v507_v14 = vld [vmem:[#allocation2] sm:$0xff]   ;;  %vm356_vm2 = vcmp.ge.s32.totalorder %v343_v40, 6  ;;  %vm357_vm3 = vcmp.lt.s32.totalorder %v343_v40, 12  ;;  %vm347_vm6 = vcmp.lt.s32.totalorder %v343_v40, 6 }
  0x17   :  { %v508_v15 = vld [vmem:[#allocation2 + $0x8] sm:$0xff]   ;;  %v509_v16 = vld [vmem:[#allocation2 + $0x10] sm:$0xff]   ;;  %v510_v17 = vld [vmem:[#allocation2 + $0x18] sm:$0xff]   ;;  %492 = vset.pattern.permute.xlu0 %v544_v38  ;;  %493 = vset.pattern.permute.xlu1 %v545_v51  ;;  %vm369_vm8 = vcmp.eq.s32.totalorder %v343_v40, 0 }
  0x18   :  { %v511_v18 = vld [vmem:[#allocation2 + $0x20] sm:$0xff]   ;;  %v512_v19 = vld [vmem:[#allocation2 + $0x28] sm:$0xff]   ;;  %v513_v28 = vld [vmem:[#allocation2 + $0x30] sm:$0xff]  }
  0x19   :  { %433 = vmatpush3.bf16.msra.mxu0 %v496_v2  ;;  %445 = vmatpush3.bf16.msra.mxu1 %v500_v5  ;;  %v383_v20 = vld [vmem:[%s679_s5] ss:$0 sm:$0xff]  ;;  %v514_v29 = vld [vmem:[#allocation2 + $0x38] sm:$0xff]   ;;  %v389_v30 = vld [vmem:[%s679_s5 + $0x1] ss:$0 sm:$0xff] }
  0x1a   :  { %434 = vmatprep.subr.bf16.mxu0 %v542_v0  ;;  %446 = vmatprep.subr.bf16.mxu1 %v542_v0  ;;  %v398_v41 = vld [vmem:[%s679_s5 + $0x2] ss:$0 sm:$0xff]  ;;  %vm358_vm4 = vmand %vm356_vm2, %vm357_vm3  ;;  %s546_s5 = smov 127  }
  0x1b   :  { %v344_v48 = vld [vmem:[%s675_s1] sm:$0xff] }
  0x1c   :  { %v482_v49 = vtrunc.f32 %v344_v48  ;;  %v346_v52 = vsub.f32 1.0, %v344_v48 }
  0x1d   :  { %435 = vmatpush3.bf16.msra.mxu0 %v497_v4  ;;  %447 = vmatpush3.bf16.msra.mxu1 %v501_v7 }
  0x1e   :  { %436 = vmatprep.subr.bf16.mxu0 %v542_v0  ;;  %448 = vmatprep.subr.bf16.mxu1 %v542_v0  ;;  %v483_v50 = vcvt.f32.s32 %v482_v49 }
  0x21   :  { %437 = vmatpush3.bf16.msra.mxu0 %v498_v6  ;;  %449 = vmatpush3.bf16.msra.mxu1 %v502_v9 }
  0x22   :  { %462 = vmatprep.subr.bf16.mxu0 %v542_v0  ;;  %450 = vmatprep.subr.bf16.mxu1 %v542_v0 }
  0x24   :  { %439 = vmatmul.mubr.msk.bf16.vlgmr.msra.gmra.mrb[0].mxu0 %vm76_vm1, %v38_v8 }
  0x25   :  { %478 = vmatprep.mubr.msk.bf16.mxu0 %vm543_vm0, %v542_v0  ;;  %451 = vmatpush3.bf16.msra.mxu1 %v503_v10 }
  0x26   :  { %452 = vmatprep.subr.bf16.mxu1 %v542_v0  ;;  %463 = vmatpush3.bf16.msra.mxu0 %v507_v14 }
  0x27   :  { %464 = vmatprep.subr.bf16.mxu0 %v542_v0 }
  0x29   :  { %453 = vmatpush3.bf16.msra.mxu1 %v504_v11 }
  0x2a   :  { %454 = vmatprep.subr.bf16.mxu1 %v542_v0  ;;  %465 = vmatpush3.bf16.msra.mxu0 %v508_v15 }
  0x2b   :  { %466 = vmatprep.subr.bf16.mxu0 %v542_v0 }
  0x2d   :  { %455 = vmatpush3.bf16.msra.mxu1 %v505_v12 }
  0x2e   :  { %456 = vmatprep.subr.bf16.mxu1 %v542_v0  ;;  %467 = vmatpush3.bf16.msra.mxu0 %v509_v16 }
  0x2f   :  { %468 = vmatprep.subr.bf16.mxu0 %v542_v0 }
  0x31   :  { %457 = vmatpush3.bf16.msra.mxu1 %v506_v13 }
  0x32   :  { %469 = vmatpush3.bf16.msra.mxu0 %v510_v17 }
  0x33   :  { %470 = vmatprep.subr.bf16.mxu0 %v542_v0 }
  0x36   :  { %471 = vmatpush3.bf16.msra.mxu0 %v511_v18 }
  0x37   :  { %472 = vmatprep.subr.bf16.mxu0 %v542_v0 }
  0x3a   :  { %473 = vmatpush3.bf16.msra.mxu0 %v512_v19 }
  0x3b   :  { %474 = vmatprep.subr.bf16.mxu0 %v542_v0 }
  0x3e   :  { %475 = vmatpush3.bf16.msra.mxu0 %v513_v28 }
  0x3f   :  { %476 = vmatprep.subr.bf16.mxu0 %v542_v0 }
  0x42   :  { %477 = vmatpush3.bf16.msra.mxu0 %v514_v29 }
  0xf7   :  { %v114_v21 = vpop.f32.mrb[0].mxu0 }
  0xf8   :  { %v115_v22 = vadd.f32 %v383_v20, %v114_v21  ;;  %v440_v23 = vpop.f32.mrb[1].mxu0 }
  0xf9   :  { %v117_v24 = vpop.f32.mrb[2].mxu0 }
  0xfa   :  { %v120_v25 = vmax.f32 %v115_v22, 0.0  ;;  %v441_v26 = vpop.f32.mrb[3].mxu0 }
  0xfc   :  { %v121_v27 = vpack.c.bf16 %v120_v25, %v120_v25 }
  0xfe   :  { %459 = vmatmul.mubr.bf16.vlgmr.msra.gmra.mrb[0].mxu1 %v121_v27 }
 0x1d1   :  { %v225_v31 = vpop.f32.mrb[0].mxu1 }
 0x1d2   :  { %v226_v32 = vadd.f32 %v389_v30, %v225_v31  ;;  %v460_v33 = vpop.f32.mrb[1].mxu1 }
 0x1d3   :  { %v228_v34 = vpop.f32.mrb[2].mxu1 }
 0x1d4   :  { %v231_v35 = vmax.f32 %v226_v32, 0.0  ;;  %v461_v36 = vpop.f32.mrb[3].mxu1 }
 0x1d6   :  { %v232_v37 = vpack.c.bf16 %v231_v35, %v231_v35 }
 0x1d8   :  { %479 = vmatmul.mubr.bf16.vlgmr.msra.gmra.mrb[4].mxu0 %v232_v37 }
 0x2ab   :  { %v336_v42 = vpop.f32.mrb[4].mxu0 }
 0x2ac   :  { %v337_v43 = vadd.f32 %v398_v41, %v336_v42  ;;  %v480_v44 = vpop.f32.mrb[5].mxu0 }
 0x2ad   :  { %v339_v45 = vpop.f32.mrb[6].mxu0 }
 0x2ae   :  { %v481_v46 = vpop.f32.mrb[7].mxu0  ;;  %v359_v47 = vsel %vm358_vm4, %v337_v43, -inf }
 0x2af   :  { %360 = vmax.xlane.f32.xlu0 %v359_v47 }
 0x2c5   :  { %349 = vperm.xlu0 %492, %v483_v50  }
 0x2c9   :  { %494 = vset.pattern.permute.xlu0 %v545_v51 }
 0x33c   :  { %v361_v53 = vpop.xlane.xlu0 %360 }
 0x33d   :  { %v362_v54 = vmul.f32 0.99, %v361_v53 }
 0x33f   :  { %v363_v55 = vmul.f32 %v362_v54, %v346_v52 }
 0x341   :  { %365 = vrot.lane.b32.xlu1 %v363_v55, %s546_s5 }
 0x344   :  { %v350_v56 = vpop.permute.xlu0 %349 }
 0x345   :  { %vm351_vm5 = vcmp.eq.s32.totalorder %v343_v40, %v350_v56 }
 0x346   :  { %vm352_vm7 = vmand %vm347_vm6, %vm351_vm5 }
 0x347   :  { %v353_v57 = vsel %vm352_vm7, %v337_v43, 0.0 }
 0x365   :  { %354 = vadd.xlane.f32.xlu1 %v353_v57 }
 0x3b3   :  { %v366_v58 = vpop.permute.xlu1 %365 }
 0x3b4   :  { %v368_v59 = vadd.f32 %v366_v58, %v344_v48 }
 0x3b6   :  { %372 = vperm.xlu1 %493, %v368_v59  }
 0x3f2   :  { %v355_v60 = vpop.xlane.xlu1 %354 }
 0x435   :  { %v373_v61 = vpop.permute.xlu1 %372 }
 0x436   :  { %v375_v62 = vsel %vm369_vm8, %v373_v61, %v355_v60 }
 0x437   :  { %377 = vst.msk [vmem:[%s680_s6] sm:$0xff] %vm376_vm9, %v375_v62 }
 0x438   :  { %382 = vsyncpa [#allocation3], 1 }

</bundles_post_ra>
